<compile_context>
chip_gen: v5e
topology: v5e:2x2
jax: 0.10.0
libtpu: 0.0.40
codegen_flags: <defaults>
</compile_context>

<pallas_src>
import functools

import numpy as np
import jax
import jax.numpy as jnp
from jax import lax
from jax.experimental import pallas as pl
from jax.experimental.pallas import tpu as pltpu


def _pick_batch_block(N, per_img_bytes, budget=16 << 20):
    """Largest divisor of N whose estimated per-step VMEM stays under `budget`,
    preferring an even grid-step count (v7x: 2 TensorCores share the parallel
    batch axis), then >= 2 steps, then any fitting size."""
    fits = [b for b in range(1, N + 1)
            if N % b == 0 and b * per_img_bytes <= budget]
    if not fits:
        # TODO(synk): add row tiling with a (Kh-1)-row halo (second parallel grid
        # axis) for single images whose block exceeds the budget; until then we
        # rely on the explicit vmem_limit_bytes headroom.
        return 1
    even = [b for b in fits if (N // b) % 2 == 0]
    multi = [b for b in fits if (N // b) >= 2]
    if even:
        return max(even)
    if multi:
        return max(multi)
    return max(fits)


def _conv_deriv_kernel(x_ref, o_ref, *, groups, distinct_j, Ho, Wo):
    """One grid step = B_blk batch images.

    x_ref : VMEM (B_blk, H,  W ) float32   (full unpadded image rows/cols)
    o_ref : VMEM (B_blk, Ho, Wo) float32   (exact 'valid' convolution output)

    groups     : ((tap_value, ((i, j), ...)), ...) -- taps grouped by value,
                 with 1/resol folded in (compile-time Python constants).
    distinct_j : distinct nonzero-tap column offsets (lane shifts hoisted once).
    """
    x = x_ref[...]                                          # (B, H, W)

    # One lane-shifted, width-Wo copy per distinct column offset j.  These are
    # static slices (XLU lane rotate/select), paid once per block instead of once
    # per tap; sublane-offset row windows below are cheap sublane slices.
    cols = {j: x[:, :, j:j + Wo] for j in distinct_j}       # each (B, H, Wo)

    acc = jnp.zeros(o_ref.shape, jnp.float32)
    for t, offsets in groups:
        s = None
        for (i, j) in offsets:
            w = cols[j][:, i:i + Ho, :]                     # (B, Ho, Wo)
            s = w if s is None else s + w
        acc = acc + t * s                                   # one mul per distinct tap value
    o_ref[...] = acc


def conv2d_derivative(x, der_filter, resol, *, interpret=False):
    """Pallas equivalent of Conv2dDerivative.forward.

    x          : (N, 1, H, W) float32 (PyTorch NCHW, single channel)
    der_filter : constant derivative filter, shape (..., Kh, Kw), e.g. (1, 1, 5, 5)
    resol      : python float; the convolution output is divided by it
    returns    : (N, 1, H - Kh + 1, W - Kw + 1) float32
    """
    N, C, H, W = x.shape
    assert C == 1, "Conv2dDerivative uses a single input/output channel"

    filt = np.asarray(der_filter, dtype=np.float64)
    Kh, Kw = int(filt.shape[-2]), int(filt.shape[-1])
    filt = filt.reshape(Kh, Kw) / float(resol)          # fold 1/resol into the taps
    Ho, Wo = H - Kh + 1, W - Kw + 1
    assert Ho >= 1 and Wo >= 1, "input smaller than the derivative stencil"

    # Group nonzero taps by value (compile-time), skip zeros (9 of 25 for the
    # 4th-order Laplacian stencil).
    by_val = {}
    for i in range(Kh):
        for j in range(Kw):
            t = float(filt[i, j])
            if t != 0.0:
                by_val.setdefault(t, []).append((i, j))
    groups = tuple((t, tuple(offs)) for t, offs in by_val.items())
    distinct_j = tuple(sorted({j for _, offs in groups for (_, j) in offs}))
    nnz = sum(len(offs) for _, offs in groups)

    # VMEM estimate per image per grid step: double-buffered in/out blocks, the
    # loaded x value + accumulator, and one hoisted shifted copy per distinct j.
    in_b, out_b, shift_b = 4 * H * W, 4 * Ho * Wo, 4 * H * Wo
    per_img = 3 * in_b + 3 * out_b + len(distinct_j) * shift_b
    B_blk = _pick_batch_block(N, per_img)
    grid = (N // B_blk,)

    xs = x.reshape(N, H, W).astype(jnp.float32)         # squeeze channel (no HBM pass)

    kernel = functools.partial(
        _conv_deriv_kernel, groups=groups, distinct_j=distinct_j, Ho=Ho, Wo=Wo)

    out = pl.pallas_call(
        kernel,
        out_shape=jax.ShapeDtypeStruct((N, Ho, Wo), jnp.float32),
        grid=grid,
        in_specs=[pl.BlockSpec((B_blk, H, W), lambda n: (n, 0, 0))],
        out_specs=pl.BlockSpec((B_blk, Ho, Wo), lambda n: (n, 0, 0)),
        compiler_params=pltpu.CompilerParams(
            dimension_semantics=("parallel",),
            vmem_limit_bytes=48 << 20),
        cost_estimate=pl.CostEstimate(
            flops=2 * max(nnz, 1) * N * Ho * Wo,
            transcendentals=0,
            bytes_accessed=4 * N * (H * W + Ho * Wo)),
        interpret=interpret,
    )(xs)

    return out.reshape(N, 1, Ho, Wo)                     # restore NCHW (free reshape)


def _reference(x, der_filter, resol):
    """Pure-JAX reference (lax conv, NCHW / OIHW) for correctness checking."""
    w = jnp.asarray(np.asarray(der_filter, dtype=np.float32))
    Kh, Kw = int(w.shape[-2]), int(w.shape[-1])
    w = w.reshape(1, 1, Kh, Kw)
    y = lax.conv_general_dilated(
        x.astype(jnp.float32), w,
        window_strides=(1, 1), padding="VALID",
        dimension_numbers=("NCHW", "OIHW", "NCHW"),
        precision=lax.Precision.HIGHEST,
    )
    return y / resol


if __name__ == "__main__":
    # 4th-order 5x5 Laplacian stencil (the typical DerFilter), resol = dx^2.
    lap_2d = [
        [0.0,          0.0,        -1.0 / 12.0,  0.0,        0.0],
        [0.0,          0.0,         4.0 / 3.0,   0.0,        0.0],
        [-1.0 / 12.0,  4.0 / 3.0,  -5.0,         4.0 / 3.0, -1.0 / 12.0],
        [0.0,          0.0,         4.0 / 3.0,   0.0,        0.0],
        [0.0,          0.0,        -1.0 / 12.0,  0.0,        0.0],
    ]
    lap_filter = np.asarray([[lap_2d]], dtype=np.float32)   # (1, 1, 5, 5) Conv2d weight
    dx = 1.0 / 16.0
    resol = dx * dx

    # Fully dense deterministic 5x5 filter (24 distinct nonzero taps, center zero)
    # to exercise the generic grouping path.
    dense = (np.arange(25, dtype=np.float64).reshape(5, 5) - 12.0) / 10.0
    dense_filter = dense[None, None].astype(np.float32)

    key = jax.random.PRNGKey(0)
    k1, k2, k3 = jax.random.split(key, 3)

    cases = [
        # small image, single lane vreg per row
        (jax.random.normal(k1, (2, 1, 16, 16), dtype=jnp.float32), lap_filter, resol),
        # wider image: W=160 crosses the 128-lane boundary, Wo=156 not lane aligned
        (jax.random.normal(k2, (4, 1, 48, 160), dtype=jnp.float32), lap_filter, resol),
        # odd batch + odd width + dense filter
        (jax.random.normal(k3, (3, 1, 20, 33), dtype=jnp.float32), dense_filter, 0.25),
    ]

    for xin, filt, res in cases:
        out = jax.block_until_ready(conv2d_derivative(xin, filt, res))
        ref = jax.block_until_ready(_reference(xin, filt, res))
        assert out.shape == ref.shape, (out.shape, ref.shape)
        assert jnp.allclose(out, ref, rtol=1e-4, atol=1e-2), \
            float(jnp.max(jnp.abs(out - ref)))

    print("KERNEL_OK")
</pallas_src>

<mosaic_0001>
module attributes {stable_mosaic.version = 11 : i64} {
  func.func @_conv_deriv_kernel(%arg0: i32, %arg1: memref<1x16x16xf32, #tpu.memory_space<vmem>>, %arg2: memref<1x12x12xf32, #tpu.memory_space<vmem>>) attributes {dimension_semantics = [#tpu.dimension_semantics<parallel>], iteration_bounds = array<i64: 2>, scalar_prefetch = 0 : i64, scratch_operands = 0 : i64, tpu.core_type = #tpu.core_type<tc>, window_params = [{transform_indices = @transform_0, window_bounds = array<i64: 1, 16, 16>}, {transform_indices = @transform_1, window_bounds = array<i64: 1, 12, 12>}]} {
    %c0 = arith.constant 0 : index
    %c0_0 = arith.constant 0 : index
    %c0_1 = arith.constant 0 : index
    %0 = vector.load %arg1[%c0, %c0_0, %c0_1] : memref<1x16x16xf32, #tpu.memory_space<vmem>>, vector<1x16x16xf32>
    %1 = vector.extract_strided_slice %0 {offsets = [0, 0, 0], sizes = [1, 16, 12], strides = [1, 1, 1]} : vector<1x16x16xf32> to vector<1x16x12xf32>
    %2 = vector.extract_strided_slice %0 {offsets = [0, 0, 1], sizes = [1, 16, 12], strides = [1, 1, 1]} : vector<1x16x16xf32> to vector<1x16x12xf32>
    %3 = vector.extract_strided_slice %0 {offsets = [0, 0, 2], sizes = [1, 16, 12], strides = [1, 1, 1]} : vector<1x16x16xf32> to vector<1x16x12xf32>
    %4 = vector.extract_strided_slice %0 {offsets = [0, 0, 3], sizes = [1, 16, 12], strides = [1, 1, 1]} : vector<1x16x16xf32> to vector<1x16x12xf32>
    %5 = vector.extract_strided_slice %0 {offsets = [0, 0, 4], sizes = [1, 16, 12], strides = [1, 1, 1]} : vector<1x16x16xf32> to vector<1x16x12xf32>
    %cst = arith.constant 0.000000e+00 : f32
    %6 = vector.broadcast %cst : f32 to vector<1x12x12xf32>
    %7 = vector.extract_strided_slice %3 {offsets = [0, 0, 0], sizes = [1, 12, 12], strides = [1, 1, 1]} : vector<1x16x12xf32> to vector<1x12x12xf32>
    %8 = vector.extract_strided_slice %1 {offsets = [0, 2, 0], sizes = [1, 12, 12], strides = [1, 1, 1]} : vector<1x16x12xf32> to vector<1x12x12xf32>
    %9 = arith.addf %7, %8 : vector<1x12x12xf32>
    %10 = vector.extract_strided_slice %5 {offsets = [0, 2, 0], sizes = [1, 12, 12], strides = [1, 1, 1]} : vector<1x16x12xf32> to vector<1x12x12xf32>
    %11 = arith.addf %9, %10 : vector<1x12x12xf32>
    %12 = vector.extract_strided_slice %3 {offsets = [0, 4, 0], sizes = [1, 12, 12], strides = [1, 1, 1]} : vector<1x16x12xf32> to vector<1x12x12xf32>
    %13 = arith.addf %11, %12 : vector<1x12x12xf32>
    %cst_2 = arith.constant -21.333334 : f32
    %14 = vector.broadcast %cst_2 : f32 to vector<1x12x12xf32>
    %15 = arith.mulf %14, %13 : vector<1x12x12xf32>
    %16 = arith.addf %6, %15 : vector<1x12x12xf32>
    %17 = vector.extract_strided_slice %3 {offsets = [0, 1, 0], sizes = [1, 12, 12], strides = [1, 1, 1]} : vector<1x16x12xf32> to vector<1x12x12xf32>
    %18 = vector.extract_strided_slice %2 {offsets = [0, 2, 0], sizes = [1, 12, 12], strides = [1, 1, 1]} : vector<1x16x12xf32> to vector<1x12x12xf32>
    %19 = arith.addf %17, %18 : vector<1x12x12xf32>
    %20 = vector.extract_strided_slice %4 {offsets = [0, 2, 0], sizes = [1, 12, 12], strides = [1, 1, 1]} : vector<1x16x12xf32> to vector<1x12x12xf32>
    %21 = arith.addf %19, %20 : vector<1x12x12xf32>
    %22 = vector.extract_strided_slice %3 {offsets = [0, 3, 0], sizes = [1, 12, 12], strides = [1, 1, 1]} : vector<1x16x12xf32> to vector<1x12x12xf32>
    %23 = arith.addf %21, %22 : vector<1x12x12xf32>
    %cst_3 = arith.constant 341.333344 : f32
    %24 = vector.broadcast %cst_3 : f32 to vector<1x12x12xf32>
    %25 = arith.mulf %24, %23 : vector<1x12x12xf32>
    %26 = arith.addf %16, %25 : vector<1x12x12xf32>
    %27 = vector.extract_strided_slice %3 {offsets = [0, 2, 0], sizes = [1, 12, 12], strides = [1, 1, 1]} : vector<1x16x12xf32> to vector<1x12x12xf32>
    %cst_4 = arith.constant -1.280000e+03 : f32
    %28 = vector.broadcast %cst_4 : f32 to vector<1x12x12xf32>
    %29 = arith.mulf %28, %27 : vector<1x12x12xf32>
    %30 = arith.addf %26, %29 : vector<1x12x12xf32>
    %c0_5 = arith.constant 0 : index
    %c0_6 = arith.constant 0 : index
    %c0_7 = arith.constant 0 : index
    %31 = vector.load %arg2[%c0_5, %c0_6, %c0_7] : memref<1x12x12xf32, #tpu.memory_space<vmem>>, vector<1x12x12xf32>
    tpu.vector_store %arg2[%c0_5, %c0_6, %c0_7], %30 {strides = array<i32>} : memref<1x12x12xf32, #tpu.memory_space<vmem>>, vector<1x12x12xf32>,
    return
  }
  func.func @transform_0(%arg0: i32) -> (i32, i32, i32) {
    %c0_i32 = arith.constant 0 : i32
    %c0_i32_0 = arith.constant 0 : i32
    %c0_i32_1 = arith.constant 0 : i32
    return %arg0, %c0_i32, %c0_i32_0 : i32, i32, i32
  }
  func.func @transform_1(%arg0: i32) -> (i32, i32, i32) {
    %c0_i32 = arith.constant 0 : i32
    %c0_i32_0 = arith.constant 0 : i32
    %c0_i32_1 = arith.constant 0 : i32
    return %arg0, %c0_i32, %c0_i32_0 : i32, i32, i32
  }
}

</mosaic_0001>

<bundles_post_ra>
// kernel: tpu_custom_call.1
= control target key start
LH: loop header
LB: loop body
LE: loop exit
PB: predicated region body
PF: predicated region fallthrough
CT: control target
= control target key end

     0   :  { %6 = vsyncpa [#allocation3], 0  ;;  %s541_s0 = inlined_call_operand.hbm [shape: f32[2,16,16], index: 0, kind: input, shape index: {}]   ;;  %s542_s1 = inlined_call_operand.vmem [shape: f32[2,12,12], index: 1, kind: output, shape index: {}]  }
   0x1   :  { %8 = vsyncpa [#allocation3 + $0x1], 0  ;;  %s441_s6 = smov 0   ;;  %s443_s7 = smov 0  }
   0x2   :  { %s445_s8 = smov 0   ;;  %s447_s9 = smov 0  }
   0x3 LB: > { %s460_s10 = sadd.s32 4294967295, %s423_s9   ;;  %s463_s11 = sadd.s32 1, %s423_s9   ;;  %s423_s9 = sphi %s447_s9, %s549_s9   ;;  %s419_s8 = sphi %s445_s8, %s548_s8   ;;  %s415_s7 = sphi %s443_s7, %s547_s7   ;;  %s411_s6 = sphi %s441_s6, %s546_s6  }
   0x4   : > { %s18_s12 = ssub.s32 %s423_s9, %s463_s11  ;;  %s21_s13 = sadd.s32 1, %s419_s8 }
   0x5   : > { %p19_p0 = scmp.eq.s32.totalorder %s18_s12, 0  ;;  %p28_p1 = scmp.ne.s32.totalorder %s419_s8, %s415_s7 }
   0x6   : > { %p29_p2 = scmp.eq.s32.totalorder %s423_s9, 0  ;;  %p34_p3 = scmp.ne.s32.totalorder %s415_s7, %s411_s6 }
   0x7   : > { %s473_s14 = scalar_select %p19_p0, %s419_s8, %s21_s13  }
   0x8   : > { %p475_p4 = por %p29_p2, %p28_p1  ;;  %p35_p5 = scmp.eq.s32.totalorder %s460_s10, 0 }
   0x9   : > { %p320_p6 = scmp.lt.s32.totalorder %s423_s9, 2  ;;  %s84_s17 = sand.u32 1, %s419_s8  }
   0xa   : > { %p481_p7 = por %p35_p5, %p34_p3  ;;  %s303_s18 = sshll.u32 %s84_s17, 4 }
   0xb   : > { %s312_s19 = sshll.u32 %s423_s9, 4  ;;  %s88_s23 = scalar_lea.vmem [#allocation2], %s303_s18 }
   0xc   : > { %s93_s22 = scalar_lea.hbm %s541_s0, %s312_s19  ;;  %s96_s24 = sshll.u32 %s88_s23, 4  ;;  %s97_s24 = int_to_ptr.vmem [resolvable:$true] %s96_s24 }
   0xd   : > { %s94_s25 = sshll.u32 %s93_s22, 4  ;;  %p492_p8 = pnand %p320_p6, %p475_p4  ;;  %s95_s25 = int_to_ptr.hbm [resolvable:$true] %s94_s25 }
   0xe   : > { %p306_p9 = scmp.ge.s32.totalorder %s423_s9, 1  ;;  %s85_s27 = scalar_lea.sflag [#allocation3], %s84_s17 }
   0xf   : > { %s359_s28 = sshra.s32 %s95_s25, 4  ;;  %p363_p11 = pneg %p492_p8  ;;  %s360_s28 = int_to_ptr.hbm [resolvable:$true] %s359_s28 }
  0x10   : > { %s361_s29 = scalar_lea.hbm %s360_s28, 16  ;;  %s366_s3 = scalar_lea.hbm %s541_s0, 32 }
  0x11   : > { %p362_p10 = scmp.ne.s32.totalorder %s360_s28, %s361_s29  ;;  %p367_p0 = scmp.lt.s32.totalorder %s360_s28, %s541_s0 }
  0x12   : > { %p368_p1 = scmp.lt.s32.totalorder %s366_s3, %s361_s29 }
  0x13   : > { %p364_p12 = pnand %p363_p11, %p362_p10 }
  0x14   : > { %p369_p2 = por %p368_p1, %p367_p0 }
  0x15   : > { %p365_p13 = pneg %p364_p12 }
  0x17   : > { %p370_p3 = pnand %p369_p2, %p365_p13 }
  0x19   : > { %373 = shalt.err (!%p370_p3)
}
  0x1a   : > { %s425_s6 = smov 128   ;;  %s426_s12 = smov 8  }
  0x1b   : > { %319 = dma.hbm_to_vmem [thread:$0]  (!%p492_p8), %s95_s25, 256, %s97_s24, %s85_s27, %s425_s6, %s425_s6, %s426_s12  }
  0x1c   : > { %p104_p4 = scmp.lt.s32.totalorder %s423_s9, 3 }
  0x1e   : > { %p105_p5 = pnand %p306_p9, %p104_p4 }
  0x1f   : > { %s110_s13 = sand.u32 (!%p105_p5), 1, %s415_s7  }
  0x20   : > { %108 = sbr.rel (%p105_p5) target bundleno = 298 (0x12a), region = 24  ;;  %s307_s15 = sshll.u32 (!%p105_p5), %s110_s13, 4 }
  0x21   : > { %s111_s17 = scalar_lea.sflag (!%p105_p5), [#allocation3], %s110_s13  ;;  %s114_s18 = scalar_lea.vmem (!%p105_p5), [#allocation2], %s307_s15 }
  0x25   : > { %406 = dma.done.wait (%p481_p7), %s111_s17, 256  }
  0x26   : > { %408 = vsyncadd (%p481_p7), %s111_s17, 4294967040  ;;  %v140_v0 = vld [vmem:[%s114_s18 + $0x8] sm:$0xff]  ;;  %v139_v1 = vld [vmem:[%s114_s18] sm:$0xff]  ;;  %vm143_vm0 = vcmask 1045504   ;;  %s427_s9 = smov 127   ;;  %s428_s19 = smov 1  }
  0x27   : > { %v177_v2 = vrot.slane %v140_v0, 1  ;;  %v145_v3 = vrot.slane %v140_v0, 2  ;;  %v144_v4 = vrot.slane %v139_v1, 2  ;;  %v176_v6 = vrot.slane %v139_v1, 1  ;;  %s429_s20 = smov 2   ;;  %s430_s16 = smov 126  }
  0x28   : > { %vm175_vm1 = vcmask 1046528   ;;  %v165_v19 = vrot.slane %v140_v0, 4  ;;  %v164_v20 = vrot.slane %v139_v1, 4  ;;  %vm163_vm2 = vcmask 1043456   ;;  %p134_p6 = scmp.lt.s32.totalorder %s460_s10, 1 }
  0x29   : > { %189 = vrot.lane.b32.xlu1 %v177_v2, %s427_s9  ;;  %181 = vrot.lane.b32.xlu0 %v177_v2, %s428_s19  ;;  %v146_v5 = vsel %vm143_vm0, %v144_v4, %v145_v3  ;;  %v178_v7 = vsel %vm175_vm1, %v176_v6, %v177_v2  ;;  %v211_v23 = vmul.f32 -1280.0, %v140_v0  ;;  %v210_v24 = vmul.f32 -1280.0, %v139_v1 }
  0x2a   : > { %147 = vrot.lane.b32.xlu2 %v146_v5, %s429_s20  ;;  %v166_v29 = vsel %vm163_vm2, %v164_v20, %v165_v19  ;;  %s551_s10 = smov (!%p134_p6, %s460_s10), 1  ;;  %vm229_vm3 = vcmask 97280   ;;  %vm231_vm4 = vcmask 93184  }
  0x2b   : > { %v215_v34 = vrot.slane %v211_v23, 2  ;;  %v214_v35 = vrot.slane %v210_v24, 2  ;;  %s313_s21 = sshll.u32 %s551_s10, 4 }
  0x2c   : > { %s138_s24 = scalar_lea.vmem %s542_s1, %s313_s21 }
  0x2d   : > { %v216_v42 = vsel %vm143_vm0, %v214_v35, %v215_v34 }
  0x31   : > { %187 = vrot.lane.b32.xlu1 %v178_v7, %s427_s9  ;;  %179 = vrot.lane.b32.xlu0 %v178_v7, %s428_s19 }
  0x32   : > { %149 = vrot.lane.b32.xlu2 %v145_v3, %s429_s20 }
  0x39   : > { %157 = vrot.lane.b32.xlu1 %v145_v3, %s430_s16  ;;  %155 = vrot.lane.b32.xlu0 %v146_v5, %s430_s16 }
  0x84   : > { %v148_v8 = vpop.permute.xlu2 %147 }
  0x85   : > { %v153_v25 = vadd.f32 %v148_v8, %v139_v1 }
  0x8c   : > { %v150_v16 = vpop.permute.xlu2 %149 }
  0x8d   : > { %v154_v22 = vadd.f32 %v150_v16, %v140_v0 }
  0x9b   : > { %v190_v9 = vpop.permute.xlu1 %189  ;;  %v182_v10 = vpop.permute.xlu0 %181 }
  0x9c   : > { %v186_v11 = vadd.f32 %v182_v10, %v140_v0 }
  0x9e   : > { %v194_v12 = vadd.f32 %v190_v9, %v186_v11 }
  0xa0   : > { %v198_v18 = vadd.f32 %v194_v12, %v145_v3 }
  0xa2   : > { %v200_v27 = vmul.f32 341.33334, %v198_v18 }
  0xa3   : > { %v188_v13 = vpop.permute.xlu1 %187  ;;  %v180_v14 = vpop.permute.xlu0 %179 }
  0xa4   : > { %v185_v15 = vadd.f32 %v180_v14, %v139_v1  ;;  %v204_v38 = vrot.slane %v200_v27, 1 }
  0xa6   : > { %v193_v17 = vadd.f32 %v188_v13, %v185_v15 }
  0xa8   : > { %v197_v21 = vadd.f32 %v193_v17, %v146_v5 }
  0xaa   : > { %v199_v26 = vmul.f32 341.33334, %v197_v21 }
  0xab   : > { %v158_v28 = vpop.permute.xlu1 %157  ;;  %v156_v30 = vpop.permute.xlu0 %155 }
  0xac   : > { %v162_v31 = vadd.f32 %v158_v28, %v154_v22  ;;  %v161_v32 = vadd.f32 %v156_v30, %v153_v25  ;;  %v203_v33 = vrot.slane %v199_v26, 1 }
  0xae   : > { %v170_v36 = vadd.f32 %v165_v19, %v162_v31  ;;  %v169_v37 = vadd.f32 %v166_v29, %v161_v32  ;;  %v205_v41 = vsel %vm175_vm1, %v203_v33, %v204_v38 }
  0xb0   : > { %v172_v39 = vmul.f32 -21.333334, %v170_v36  ;;  %v171_v40 = vmul.f32 -21.333334, %v169_v37 }
  0xb2   : > { %v209_v43 = vadd.f32 %v204_v38, %v172_v39  ;;  %v208_v44 = vadd.f32 %v205_v41, %v171_v40 }
  0xb4   : > { %v220_v45 = vadd.f32 %v215_v34, %v209_v43  ;;  %v219_v46 = vadd.f32 %v216_v42, %v208_v44 }
  0xb6   : > { %225 = vrot.lane.b32.xlu0 %v220_v45, %s430_s16  ;;  %223 = vrot.lane.b32.xlu2 %v219_v46, %s430_s16 }
 0x110   : > { %v224_v47 = vpop.permute.xlu2 %223 }
 0x111   : > { %230 = vst.msk [vmem:[%s138_s24] sm:$0xff] %vm229_vm3, %v224_v47 }
 0x128   : > { %v226_v48 = vpop.permute.xlu0 %225 }
 0x129   : > { %232 = vst.msk [vmem:[%s138_s24 + $0x8] sm:$0xf] %vm231_vm4, %v226_v48 }
 0x12a PF: > { %p11_p7 = scmp.ge.s32.totalorder %s463_s11, 4   ;;  %s546_s6 = smov %s415_s7 }
 0x12b   : > { %s547_s7 = smov %s419_s8  ;;  %s548_s8 = smov %s473_s14 }
 0x12c   : > { %s549_s9 = smov %s463_s11  ;;  %13 = sbr.rel (!%p11_p7) target bundleno = 3 (0x3), region = 64 }
 0x131   :  { %254 = vsyncpa [#allocation3], 1 }
 0x132   :  { %256 = vsyncpa [#allocation3 + $0x1], 1 }

</bundles_post_ra>
